<compile_context>
chip_gen: v7x
topology: tpu7x:2x2x1
jax: 0.10.0
libtpu: 0.0.40
codegen_flags: <defaults>
</compile_context>

<pallas_src>
import math

import jax
import jax.numpy as jnp
from jax import lax
from jax.experimental import pallas as pl
from jax.experimental.pallas import tpu as pltpu

_INV_SQRT2 = 1.0 / math.sqrt(2.0)
_LN_EPS = 1e-5


def _mlp_proj_kernel(x_ref, w1_ref, b1_ref, w2_ref, b2_ref, g_ref, beta_ref, o_ref):
    # Linear 1: bf16 x bf16 -> f32 accumulation on the MXU.
    h = jnp.dot(x_ref[...], w1_ref[...], preferred_element_type=jnp.float32)
    h = h + b1_ref[...]

    # Exact (erf) GELU in f32 — matches torch.nn.GELU(approximate='none').
    h = h * (0.5 * (1.0 + lax.erf(h * _INV_SQRT2)))

    # Linear 2: cast activations to bf16 for the MXU, accumulate in f32.
    y = jnp.dot(h.astype(w2_ref.dtype), w2_ref[...], preferred_element_type=jnp.float32)
    y = y + b2_ref[...]

    # LayerNorm over the last dim (biased variance, eps inside rsqrt), f32.
    mean = jnp.mean(y, axis=-1, keepdims=True)
    centered = y - mean
    var = jnp.mean(centered * centered, axis=-1, keepdims=True)
    out = centered * lax.rsqrt(var + _LN_EPS) * g_ref[...] + beta_ref[...]

    o_ref[...] = out.astype(o_ref.dtype)


def _round_up(x, m):
    return -(-x // m) * m


def _plan_tiling(B, C, D, requested_tile_b, budget_bytes):
    """Pick a batch tile and a VMEM limit that fit the budget."""
    tile = max(8, min(_round_up(requested_tile_b, 8), _round_up(B, 8)))

    weights = (C * C + C * D) * 2          # bf16 w1 + w2, single-buffered
    params = (C + 3 * D) * 4 * 2           # b1 / b2 / gamma / beta (f32)

    def footprint(t):
        x_tiles = t * C * 2 * 2            # bf16 input tile, double-buffered
        o_tiles = t * D * 4 * 2            # output tile, double-buffered
        interm = t * (C + D) * 4 * 2       # f32 h / y intermediates (estimate)
        return weights + params + x_tiles + o_tiles + interm

    while tile > 8 and footprint(tile) > budget_bytes:
        tile = max(8, _round_up(tile // 2, 8))

    # Prefer >=2 grid steps (dual-TC chips) when each half-tile stays MXU-sized.
    if _round_up(B, tile) // tile < 2 and tile >= 256:
        tile = _round_up(tile // 2, 8)

    vmem_limit = int(min(footprint(tile) + (4 << 20), 64 << 20))
    return tile, vmem_limit


def mlp_proj_forward(x, w1, b1, w2, b2, gamma, beta, *, tile_b=256):
    """x: [..., clip_dim]; w1: [clip, clip]; w2: [clip, cross]. Returns [..., cross]."""
    C = w1.shape[0]
    D = w2.shape[1]
    lead_shape = x.shape[:-1]
    x2 = x.reshape(-1, C)
    B = x2.shape[0]

    tile_b, vmem_limit = _plan_tiling(B, C, D, tile_b, budget_bytes=48 << 20)

    # bf16 MXU inputs, f32 accumulation inside the kernel. Cast before padding
    # so the (cheap) wrapper pad works on the narrower dtype.
    x_bf = x2.astype(jnp.bfloat16)
    padded_B = _round_up(B, tile_b)
    if padded_B != B:
        x_bf = jnp.pad(x_bf, ((0, padded_B - B), (0, 0)))

    w1_bf = w1.astype(jnp.bfloat16)
    w2_bf = w2.astype(jnp.bfloat16)

    b1_2d = b1.reshape(1, C).astype(jnp.float32)
    b2_2d = b2.reshape(1, D).astype(jnp.float32)
    g_2d = gamma.reshape(1, D).astype(jnp.float32)
    beta_2d = beta.reshape(1, D).astype(jnp.float32)

    grid = (padded_B // tile_b,)

    flops = 2 * padded_B * C * (C + D)
    bytes_accessed = (
        padded_B * C * 2 + padded_B * D * x.dtype.itemsize
        + (C * C + C * D) * 2 + (C + 3 * D) * 4
    )
    cost = pl.CostEstimate(flops=flops, transcendentals=padded_B * C,
                           bytes_accessed=bytes_accessed)

    def _call(single_buffer_consts):
        const_kwargs = (
            dict(pipeline_mode=pl.Buffered(1)) if single_buffer_consts else {}
        )
        return pl.pallas_call(
            _mlp_proj_kernel,
            out_shape=jax.ShapeDtypeStruct((padded_B, D), x.dtype),
            grid_spec=pltpu.PrefetchScalarGridSpec(
                num_scalar_prefetch=0,
                grid=grid,
                in_specs=[
                    pl.BlockSpec((tile_b, C), lambda i: (i, 0)),              # x tile
                    pl.BlockSpec((C, C), lambda i: (0, 0), **const_kwargs),   # w1
                    pl.BlockSpec((1, C), lambda i: (0, 0), **const_kwargs),   # b1
                    pl.BlockSpec((C, D), lambda i: (0, 0), **const_kwargs),   # w2
                    pl.BlockSpec((1, D), lambda i: (0, 0), **const_kwargs),   # b2
                    pl.BlockSpec((1, D), lambda i: (0, 0), **const_kwargs),   # gamma
                    pl.BlockSpec((1, D), lambda i: (0, 0), **const_kwargs),   # beta
                ],
                out_specs=pl.BlockSpec((tile_b, D), lambda i: (i, 0)),
            ),
            compiler_params=pltpu.CompilerParams(
                dimension_semantics=("parallel",),
                vmem_limit_bytes=vmem_limit,
            ),
            cost_estimate=cost,
        )(x_bf, w1_bf, b1_2d, w2_bf, b2_2d, g_2d, beta_2d)

    try:
        out = _call(True)
    except Exception:
        # Fall back to default double-buffering if the single-buffer hint
        # (pl.Buffered(1)) is not accepted by this JAX build.
        out = _call(False)

    out = out[:B]
    return out.reshape(*lead_shape, D)


def _reference(x, w1, b1, w2, b2, gamma, beta, *, matmul_dtype=jnp.float32):
    xd = x.astype(matmul_dtype)
    h = jnp.dot(xd, w1.astype(matmul_dtype), preferred_element_type=jnp.float32) + b1
    h = h * (0.5 * (1.0 + lax.erf(h * _INV_SQRT2)))
    y = jnp.dot(h.astype(matmul_dtype), w2.astype(matmul_dtype),
                preferred_element_type=jnp.float32) + b2
    mean = jnp.mean(y, axis=-1, keepdims=True)
    var = jnp.mean((y - mean) ** 2, axis=-1, keepdims=True)
    return (y - mean) * lax.rsqrt(var + _LN_EPS) * gamma + beta


if __name__ == "__main__":
    # Small shapes consistent with the module (scaled down from 1024/1024).
    B = 16              # batch of image embeddings
    CLIP_DIM = 128      # clip_embeddings_dim
    CROSS_DIM = 256     # cross_attention_dim

    key = jax.random.PRNGKey(0)
    k_x, k_w1, k_b1, k_w2, k_b2 = jax.random.split(key, 5)

    # Deterministic param init (PyTorch Linear-style uniform bounds).
    bound = 1.0 / math.sqrt(CLIP_DIM)
    w1 = jax.random.uniform(k_w1, (CLIP_DIM, CLIP_DIM), jnp.float32, -bound, bound)
    b1 = jax.random.uniform(k_b1, (CLIP_DIM,), jnp.float32, -bound, bound)
    w2 = jax.random.uniform(k_w2, (CLIP_DIM, CROSS_DIM), jnp.float32, -bound, bound)
    b2 = jax.random.uniform(k_b2, (CROSS_DIM,), jnp.float32, -bound, bound)
    gamma = jnp.ones((CROSS_DIM,), jnp.float32)   # LayerNorm weight init
    beta = jnp.zeros((CROSS_DIM,), jnp.float32)   # LayerNorm bias init

    x = jax.random.normal(k_x, (B, CLIP_DIM), jnp.float32)

    out = mlp_proj_forward(x, w1, b1, w2, b2, gamma, beta)
    out = jax.block_until_ready(out)
    assert out.shape == (B, CROSS_DIM)

    # Check against a reference that mirrors the kernel's precision
    # (bf16 MXU inputs, f32 accumulation) ...
    ref_bf16 = _reference(x, w1, b1, w2, b2, gamma, beta, matmul_dtype=jnp.bfloat16)
    assert jnp.allclose(out, ref_bf16, atol=5e-3, rtol=5e-3), "mismatch vs bf16 reference"

    # ... and against the full-f32 math with a looser tolerance (bf16 cast error).
    ref_f32 = _reference(x, w1, b1, w2, b2, gamma, beta, matmul_dtype=jnp.float32)
    assert jnp.allclose(out, ref_f32, atol=5e-2, rtol=5e-2), "mismatch vs f32 reference"

    print("KERNEL_OK")
</pallas_src>

<mosaic_0001>
module attributes {stable_mosaic.version = 11 : i64} {
  func.func @_mlp_proj_kernel(%arg0: i32, %arg1: memref<16x128xbf16, #tpu.memory_space<vmem>>, %arg2: memref<128x128xbf16, #tpu.memory_space<vmem>>, %arg3: memref<1x128xf32, #tpu.memory_space<vmem>>, %arg4: memref<128x256xbf16, #tpu.memory_space<vmem>>, %arg5: memref<1x256xf32, #tpu.memory_space<vmem>>, %arg6: memref<1x256xf32, #tpu.memory_space<vmem>>, %arg7: memref<1x256xf32, #tpu.memory_space<vmem>>, %arg8: memref<16x256xf32, #tpu.memory_space<vmem>>) attributes {dimension_semantics = [#tpu.dimension_semantics<parallel>], iteration_bounds = array<i64: 1>, scalar_prefetch = 0 : i64, scratch_operands = 0 : i64, tpu.core_type = #tpu.core_type<tc>, window_params = [{transform_indices = @transform_0, window_bounds = array<i64: 16, 128>}, {pipeline_mode = #tpu.pipeline_mode<synchronous>, transform_indices = @transform_1, window_bounds = array<i64: 128, 128>}, {pipeline_mode = #tpu.pipeline_mode<synchronous>, transform_indices = @transform_2, window_bounds = array<i64: 1, 128>}, {pipeline_mode = #tpu.pipeline_mode<synchronous>, transform_indices = @transform_3, window_bounds = array<i64: 128, 256>}, {pipeline_mode = #tpu.pipeline_mode<synchronous>, transform_indices = @transform_4, window_bounds = array<i64: 1, 256>}, {pipeline_mode = #tpu.pipeline_mode<synchronous>, transform_indices = @transform_5, window_bounds = array<i64: 1, 256>}, {pipeline_mode = #tpu.pipeline_mode<synchronous>, transform_indices = @transform_6, window_bounds = array<i64: 1, 256>}, {transform_indices = @transform_7, window_bounds = array<i64: 16, 256>}]} {
    %c0 = arith.constant 0 : index
    %c0_0 = arith.constant 0 : index
    %0 = vector.load %arg1[%c0, %c0_0] : memref<16x128xbf16, #tpu.memory_space<vmem>>, vector<16x128xbf16>
    %c0_1 = arith.constant 0 : index
    %c0_2 = arith.constant 0 : index
    %1 = vector.load %arg2[%c0_1, %c0_2] : memref<128x128xbf16, #tpu.memory_space<vmem>>, vector<128x128xbf16>
    %cst = arith.constant dense<0.000000e+00> : vector<16x128xf32>
    %2 = tpu.matmul %0, %1, %cst {dimension_numbers = #tpu.dot_dimension_numbers<[1], [0], [0], [1], [0, 0, 1, 1], [], []>} : vector<16x128xbf16>, vector<128x128xbf16>, vector<16x128xf32> -> vector<16x128xf32>
    %c0_3 = arith.constant 0 : index
    %c0_4 = arith.constant 0 : index
    %3 = vector.load %arg3[%c0_3, %c0_4] : memref<1x128xf32, #tpu.memory_space<vmem>>, vector<1x128xf32>
    %4 = vector.broadcast %3 : vector<1x128xf32> to vector<16x128xf32>
    %5 = arith.addf %2, %4 : vector<16x128xf32>
    %cst_5 = arith.constant 0.707106769 : f32
    %6 = vector.broadcast %cst_5 : f32 to vector<16x128xf32>
    %7 = arith.mulf %5, %6 : vector<16x128xf32>
    %8 = math.erf %7 : vector<16x128xf32>
    %cst_6 = arith.constant 1.000000e+00 : f32
    %9 = vector.broadcast %cst_6 : f32 to vector<16x128xf32>
    %10 = arith.addf %9, %8 : vector<16x128xf32>
    %cst_7 = arith.constant 5.000000e-01 : f32
    %11 = vector.broadcast %cst_7 : f32 to vector<16x128xf32>
    %12 = arith.mulf %11, %10 : vector<16x128xf32>
    %13 = arith.mulf %5, %12 : vector<16x128xf32>
    %14 = arith.truncf %13 : vector<16x128xf32> to vector<16x128xbf16>
    %c0_8 = arith.constant 0 : index
    %c0_9 = arith.constant 0 : index
    %15 = vector.load %arg4[%c0_8, %c0_9] : memref<128x256xbf16, #tpu.memory_space<vmem>>, vector<128x256xbf16>
    %cst_10 = arith.constant dense<0.000000e+00> : vector<16x256xf32>
    %16 = tpu.matmul %14, %15, %cst_10 {dimension_numbers = #tpu.dot_dimension_numbers<[1], [0], [0], [1], [0, 0, 1, 1], [], []>} : vector<16x128xbf16>, vector<128x256xbf16>, vector<16x256xf32> -> vector<16x256xf32>
    %c0_11 = arith.constant 0 : index
    %c0_12 = arith.constant 0 : index
    %17 = vector.load %arg5[%c0_11, %c0_12] : memref<1x256xf32, #tpu.memory_space<vmem>>, vector<1x256xf32>
    %18 = vector.broadcast %17 : vector<1x256xf32> to vector<16x256xf32>
    %19 = arith.addf %16, %18 : vector<16x256xf32>
    %cst_13 = arith.constant dense<0.000000e+00> : vector<16xf32>
    %20 = vector.multi_reduction <add>, %19, %cst_13 [1] : vector<16x256xf32> to vector<16xf32>
    %21 = vector.shape_cast %20 : vector<16xf32> to vector<16x1xf32>
    %cst_14 = arith.constant 2.560000e+02 : f32
    %22 = vector.broadcast %cst_14 : f32 to vector<16x1xf32>
    %23 = arith.divf %21, %22 : vector<16x1xf32>
    %24 = vector.broadcast %23 : vector<16x1xf32> to vector<16x256xf32>
    %25 = arith.subf %19, %24 : vector<16x256xf32>
    %26 = arith.mulf %25, %25 : vector<16x256xf32>
    %cst_15 = arith.constant dense<0.000000e+00> : vector<16xf32>
    %27 = vector.multi_reduction <add>, %26, %cst_15 [1] : vector<16x256xf32> to vector<16xf32>
    %28 = vector.shape_cast %27 : vector<16xf32> to vector<16x1xf32>
    %cst_16 = arith.constant 2.560000e+02 : f32
    %29 = vector.broadcast %cst_16 : f32 to vector<16x1xf32>
    %30 = arith.divf %28, %29 : vector<16x1xf32>
    %cst_17 = arith.constant 9.99999974E-6 : f32
    %31 = vector.broadcast %cst_17 : f32 to vector<16x1xf32>
    %32 = arith.addf %30, %31 : vector<16x1xf32>
    %33 = math.rsqrt %32 : vector<16x1xf32>
    %34 = vector.broadcast %33 : vector<16x1xf32> to vector<16x256xf32>
    %35 = arith.mulf %25, %34 : vector<16x256xf32>
    %c0_18 = arith.constant 0 : index
    %c0_19 = arith.constant 0 : index
    %36 = vector.load %arg6[%c0_18, %c0_19] : memref<1x256xf32, #tpu.memory_space<vmem>>, vector<1x256xf32>
    %37 = vector.broadcast %36 : vector<1x256xf32> to vector<16x256xf32>
    %38 = arith.mulf %35, %37 : vector<16x256xf32>
    %c0_20 = arith.constant 0 : index
    %c0_21 = arith.constant 0 : index
    %39 = vector.load %arg7[%c0_20, %c0_21] : memref<1x256xf32, #tpu.memory_space<vmem>>, vector<1x256xf32>
    %40 = vector.broadcast %39 : vector<1x256xf32> to vector<16x256xf32>
    %41 = arith.addf %38, %40 : vector<16x256xf32>
    %c0_22 = arith.constant 0 : index
    %c0_23 = arith.constant 0 : index
    %42 = vector.load %arg8[%c0_22, %c0_23] : memref<16x256xf32, #tpu.memory_space<vmem>>, vector<16x256xf32>
    tpu.vector_store %arg8[%c0_22, %c0_23], %41 {strides = array<i32>} : memref<16x256xf32, #tpu.memory_space<vmem>>, vector<16x256xf32>,
    return
  }
  func.func @transform_0(%arg0: i32) -> (i32, i32) {
    %c0_i32 = arith.constant 0 : i32
    %c0_i32_0 = arith.constant 0 : i32
    return %arg0, %c0_i32 : i32, i32
  }
  func.func @transform_1(%arg0: i32) -> (i32, i32) {
    %c0_i32 = arith.constant 0 : i32
    %c0_i32_0 = arith.constant 0 : i32
    %c0_i32_1 = arith.constant 0 : i32
    return %c0_i32, %c0_i32_0 : i32, i32
  }
  func.func @transform_2(%arg0: i32) -> (i32, i32) {
    %c0_i32 = arith.constant 0 : i32
    %c0_i32_0 = arith.constant 0 : i32
    %c0_i32_1 = arith.constant 0 : i32
    return %c0_i32, %c0_i32_0 : i32, i32
  }
  func.func @transform_3(%arg0: i32) -> (i32, i32) {
    %c0_i32 = arith.constant 0 : i32
    %c0_i32_0 = arith.constant 0 : i32
    %c0_i32_1 = arith.constant 0 : i32
    return %c0_i32, %c0_i32_0 : i32, i32
  }
  func.func @transform_4(%arg0: i32) -> (i32, i32) {
    %c0_i32 = arith.constant 0 : i32
    %c0_i32_0 = arith.constant 0 : i32
    %c0_i32_1 = arith.constant 0 : i32
    return %c0_i32, %c0_i32_0 : i32, i32
  }
  func.func @transform_5(%arg0: i32) -> (i32, i32) {
    %c0_i32 = arith.constant 0 : i32
    %c0_i32_0 = arith.constant 0 : i32
    %c0_i32_1 = arith.constant 0 : i32
    return %c0_i32, %c0_i32_0 : i32, i32
  }
  func.func @transform_6(%arg0: i32) -> (i32, i32) {
    %c0_i32 = arith.constant 0 : i32
    %c0_i32_0 = arith.constant 0 : i32
    %c0_i32_1 = arith.constant 0 : i32
    return %c0_i32, %c0_i32_0 : i32, i32
  }
  func.func @transform_7(%arg0: i32) -> (i32, i32) {
    %c0_i32 = arith.constant 0 : i32
    %c0_i32_0 = arith.constant 0 : i32
    return %arg0, %c0_i32 : i32, i32
  }
}

module attributes {stable_mosaic.version = 11 : i64} {
  func.func @_mlp_proj_kernel(%arg0: i32, %arg1: memref<16x128xbf16, #tpu.memory_space<vmem>>, %arg2: memref<128x128xbf16, #tpu.memory_space<vmem>>, %arg3: memref<1x128xf32, #tpu.memory_space<vmem>>, %arg4: memref<128x256xbf16, #tpu.memory_space<vmem>>, %arg5: memref<1x256xf32, #tpu.memory_space<vmem>>, %arg6: memref<1x256xf32, #tpu.memory_space<vmem>>, %arg7: memref<1x256xf32, #tpu.memory_space<vmem>>, %arg8: memref<16x256xf32, #tpu.memory_space<vmem>>) attributes {dimension_semantics = [#tpu.dimension_semantics<parallel>], iteration_bounds = array<i64: 1>, scalar_prefetch = 0 : i64, scratch_operands = 0 : i64, tpu.core_type = #tpu.core_type<tc>, window_params = [{transform_indices = @transform_0, window_bounds = array<i64: 16, 128>}, {pipeline_mode = #tpu.pipeline_mode<synchronous>, transform_indices = @transform_1, window_bounds = array<i64: 128, 128>}, {pipeline_mode = #tpu.pipeline_mode<synchronous>, transform_indices = @transform_2, window_bounds = array<i64: 1, 128>}, {pipeline_mode = #tpu.pipeline_mode<synchronous>, transform_indices = @transform_3, window_bounds = array<i64: 128, 256>}, {pipeline_mode = #tpu.pipeline_mode<synchronous>, transform_indices = @transform_4, window_bounds = array<i64: 1, 256>}, {pipeline_mode = #tpu.pipeline_mode<synchronous>, transform_indices = @transform_5, window_bounds = array<i64: 1, 256>}, {pipeline_mode = #tpu.pipeline_mode<synchronous>, transform_indices = @transform_6, window_bounds = array<i64: 1, 256>}, {transform_indices = @transform_7, window_bounds = array<i64: 16, 256>}]} {
    %c0 = arith.constant 0 : index
    %c0_0 = arith.constant 0 : index
    %0 = vector.load %arg1[%c0, %c0_0] : memref<16x128xbf16, #tpu.memory_space<vmem>>, vector<16x128xbf16>
    %c0_1 = arith.constant 0 : index
    %c0_2 = arith.constant 0 : index
    %1 = vector.load %arg2[%c0_1, %c0_2] : memref<128x128xbf16, #tpu.memory_space<vmem>>, vector<128x128xbf16>
    %cst = arith.constant dense<0.000000e+00> : vector<16x128xf32>
    %2 = tpu.matmul %0, %1, %cst {dimension_numbers = #tpu.dot_dimension_numbers<[1], [0], [0], [1], [0, 0, 1, 1], [], []>} : vector<16x128xbf16>, vector<128x128xbf16>, vector<16x128xf32> -> vector<16x128xf32>
    %c0_3 = arith.constant 0 : index
    %c0_4 = arith.constant 0 : index
    %3 = vector.load %arg3[%c0_3, %c0_4] : memref<1x128xf32, #tpu.memory_space<vmem>>, vector<1x128xf32>
    %4 = vector.broadcast %3 : vector<1x128xf32> to vector<16x128xf32>
    %5 = arith.addf %2, %4 : vector<16x128xf32>
    %cst_5 = arith.constant 0.707106769 : f32
    %6 = vector.broadcast %cst_5 : f32 to vector<16x128xf32>
    %7 = arith.mulf %5, %6 : vector<16x128xf32>
    %8 = math.erf %7 : vector<16x128xf32>
    %cst_6 = arith.constant 1.000000e+00 : f32
    %9 = vector.broadcast %cst_6 : f32 to vector<16x128xf32>
    %10 = arith.addf %9, %8 : vector<16x128xf32>
    %cst_7 = arith.constant 5.000000e-01 : f32
    %11 = vector.broadcast %cst_7 : f32 to vector<16x128xf32>
    %12 = arith.mulf %11, %10 : vector<16x128xf32>
    %13 = arith.mulf %5, %12 : vector<16x128xf32>
    %14 = arith.truncf %13 : vector<16x128xf32> to vector<16x128xbf16>
    %c0_8 = arith.constant 0 : index
    %c0_9 = arith.constant 0 : index
    %15 = vector.load %arg4[%c0_8, %c0_9] : memref<128x256xbf16, #tpu.memory_space<vmem>>, vector<128x256xbf16>
    %cst_10 = arith.constant dense<0.000000e+00> : vector<16x256xf32>
    %16 = tpu.matmul %14, %15, %cst_10 {dimension_numbers = #tpu.dot_dimension_numbers<[1], [0], [0], [1], [0, 0, 1, 1], [], []>} : vector<16x128xbf16>, vector<128x256xbf16>, vector<16x256xf32> -> vector<16x256xf32>
    %c0_11 = arith.constant 0 : index
    %c0_12 = arith.constant 0 : index
    %17 = vector.load %arg5[%c0_11, %c0_12] : memref<1x256xf32, #tpu.memory_space<vmem>>, vector<1x256xf32>
    %18 = vector.broadcast %17 : vector<1x256xf32> to vector<16x256xf32>
    %19 = arith.addf %16, %18 : vector<16x256xf32>
    %cst_13 = arith.constant dense<0.000000e+00> : vector<16xf32>
    %20 = vector.multi_reduction <add>, %19, %cst_13 [1] : vector<16x256xf32> to vector<16xf32>
    %21 = vector.shape_cast %20 : vector<16xf32> to vector<16x1xf32>
    %cst_14 = arith.constant 2.560000e+02 : f32
    %22 = vector.broadcast %cst_14 : f32 to vector<16x1xf32>
    %23 = arith.divf %21, %22 : vector<16x1xf32>
    %24 = vector.broadcast %23 : vector<16x1xf32> to vector<16x256xf32>
    %25 = arith.subf %19, %24 : vector<16x256xf32>
    %26 = arith.mulf %25, %25 : vector<16x256xf32>
    %cst_15 = arith.constant dense<0.000000e+00> : vector<16xf32>
    %27 = vector.multi_reduction <add>, %26, %cst_15 [1] : vector<16x256xf32> to vector<16xf32>
    %28 = vector.shape_cast %27 : vector<16xf32> to vector<16x1xf32>
    %cst_16 = arith.constant 2.560000e+02 : f32
    %29 = vector.broadcast %cst_16 : f32 to vector<16x1xf32>
    %30 = arith.divf %28, %29 : vector<16x1xf32>
    %cst_17 = arith.constant 9.99999974E-6 : f32
    %31 = vector.broadcast %cst_17 : f32 to vector<16x1xf32>
    %32 = arith.addf %30, %31 : vector<16x1xf32>
    %33 = math.rsqrt %32 : vector<16x1xf32>
    %34 = vector.broadcast %33 : vector<16x1xf32> to vector<16x256xf32>
    %35 = arith.mulf %25, %34 : vector<16x256xf32>
    %c0_18 = arith.constant 0 : index
    %c0_19 = arith.constant 0 : index
    %36 = vector.load %arg6[%c0_18, %c0_19] : memref<1x256xf32, #tpu.memory_space<vmem>>, vector<1x256xf32>
    %37 = vector.broadcast %36 : vector<1x256xf32> to vector<16x256xf32>
    %38 = arith.mulf %35, %37 : vector<16x256xf32>
    %c0_20 = arith.constant 0 : index
    %c0_21 = arith.constant 0 : index
    %39 = vector.load %arg7[%c0_20, %c0_21] : memref<1x256xf32, #tpu.memory_space<vmem>>, vector<1x256xf32>
    %40 = vector.broadcast %39 : vector<1x256xf32> to vector<16x256xf32>
    %41 = arith.addf %38, %40 : vector<16x256xf32>
    %c0_22 = arith.constant 0 : index
    %c0_23 = arith.constant 0 : index
    %42 = vector.load %arg8[%c0_22, %c0_23] : memref<16x256xf32, #tpu.memory_space<vmem>>, vector<16x256xf32>
    tpu.vector_store %arg8[%c0_22, %c0_23], %41 {strides = array<i32>} : memref<16x256xf32, #tpu.memory_space<vmem>>, vector<16x256xf32>,
    return
  }
  func.func @transform_0(%arg0: i32) -> (i32, i32) {
    %c0_i32 = arith.constant 0 : i32
    %c0_i32_0 = arith.constant 0 : i32
    return %arg0, %c0_i32 : i32, i32
  }
  func.func @transform_1(%arg0: i32) -> (i32, i32) {
    %c0_i32 = arith.constant 0 : i32
    %c0_i32_0 = arith.constant 0 : i32
    %c0_i32_1 = arith.constant 0 : i32
    return %c0_i32, %c0_i32_0 : i32, i32
  }
  func.func @transform_2(%arg0: i32) -> (i32, i32) {
    %c0_i32 = arith.constant 0 : i32
    %c0_i32_0 = arith.constant 0 : i32
    %c0_i32_1 = arith.constant 0 : i32
    return %c0_i32, %c0_i32_0 : i32, i32
  }
  func.func @transform_3(%arg0: i32) -> (i32, i32) {
    %c0_i32 = arith.constant 0 : i32
    %c0_i32_0 = arith.constant 0 : i32
    %c0_i32_1 = arith.constant 0 : i32
    return %c0_i32, %c0_i32_0 : i32, i32
  }
  func.func @transform_4(%arg0: i32) -> (i32, i32) {
    %c0_i32 = arith.constant 0 : i32
    %c0_i32_0 = arith.constant 0 : i32
    %c0_i32_1 = arith.constant 0 : i32
    return %c0_i32, %c0_i32_0 : i32, i32
  }
  func.func @transform_5(%arg0: i32) -> (i32, i32) {
    %c0_i32 = arith.constant 0 : i32
    %c0_i32_0 = arith.constant 0 : i32
    %c0_i32_1 = arith.constant 0 : i32
    return %c0_i32, %c0_i32_0 : i32, i32
  }
  func.func @transform_6(%arg0: i32) -> (i32, i32) {
    %c0_i32 = arith.constant 0 : i32
    %c0_i32_0 = arith.constant 0 : i32
    %c0_i32_1 = arith.constant 0 : i32
    return %c0_i32, %c0_i32_0 : i32, i32
  }
  func.func @transform_7(%arg0: i32) -> (i32, i32) {
    %c0_i32 = arith.constant 0 : i32
    %c0_i32_0 = arith.constant 0 : i32
    return %arg0, %c0_i32 : i32, i32
  }
}

</mosaic_0001>

<bundles_post_ra>
// kernel: tpu_custom_call.1
= control target key start
LH: loop header
LB: loop body
LE: loop exit
PB: predicated region body
PF: predicated region fallthrough
CT: control target
= control target key end

     0   :  { %12 = vsyncpa [#allocation3], 0  ;;  %s761_s0 = inlined_call_operand.hbm [shape: bf16[16,128], index: 0, kind: input, shape index: {}]   ;;  %s762_s1 = inlined_call_operand.hbm [shape: bf16[128,128], index: 1, kind: input, shape index: {}]   ;;  %s763_s2 = inlined_call_operand.vmem [shape: f32[1,128], index: 2, kind: input, shape index: {}]   ;;  %s764_s3 = inlined_call_operand.hbm [shape: bf16[128,256], index: 3, kind: input, shape index: {}]   ;;  %s765_s4 = inlined_call_operand.vmem [shape: f32[1,256], index: 4, kind: input, shape index: {}]   ;;  %s766_s5 = inlined_call_operand.vmem [shape: f32[1,256], index: 5, kind: input, shape index: {}]   ;;  %s767_s6 = inlined_call_operand.vmem [shape: f32[1,256], index: 6, kind: input, shape index: {}]   ;;  %s768_s7 = inlined_call_operand.hbm [shape: f32[16,256], index: 7, kind: output, shape index: {}]  }
   0x1   :  { %13 = vsyncpa [#allocation6], 0 }
   0x2   :  { %14 = vsyncpa [#allocation4], 0  ;;  %s641_s24 = smov [#allocation5]   ;;  %s642_s26 = smov [#allocation2]  }
   0x3   :  { %s32_s25 = sshll.u32 %s641_s24, 4  ;;  %s20_s27 = sshll.u32 %s642_s26, 4  ;;  %s33_s25 = int_to_ptr.vmem [resolvable:$true] %s32_s25  ;;  %s694_s27 = int_to_ptr.vmem [resolvable:$true] %s20_s27 }
   0x4   :  { %s547_s30 = scalar_lea.hbm %s762_s1, 1024 }
   0x5   :  { %p548_p0 = scmp.ne.s32.totalorder %s762_s1, %s547_s30  ;;  %p551_p1 = scmp.lt.u32.totalorder %s547_s30, %s762_s1 }
   0x7   :  { %p553_p2 = pnand %p551_p1, %p548_p0 }
   0x9   :  { %556 = shalt.err (!%p553_p2)
}
   0xa   :  { %s557_s12 = scalar_lea.vmem %s33_s25, 1024  ;;  %p562_p4 = scmp.lt.s32.totalorder %s33_s25, %s33_s25 }
   0xb   :  { %p558_p3 = scmp.ne.s32.totalorder %s33_s25, %s557_s12  ;;  %p563_p5 = scmp.lt.s32.totalorder %s557_s12, %s557_s12 }
   0xd   :  { %p564_p6 = por %p563_p5, %p562_p4 }
   0xf   :  { %p565_p7 = pnand %p564_p6, %p558_p3 }
  0x11   :  { %568 = shalt.err (!%p565_p7)
}
  0x12   :  { %s643_s13 = smov 64   ;;  %s644_s14 = smov 4  }
  0x13   :  { %38 = dma.hbm_to_vmem [thread:$0]  %s762_s1, 1024, %s33_s25, [#allocation6], %s643_s13, %s643_s13, %s644_s14  }
  0x14   :  { %s569_s19 = scalar_lea.hbm %s761_s0, 128 }
  0x15   :  { %p570_p8 = scmp.ne.s32.totalorder %s761_s0, %s569_s19  ;;  %p573_p9 = scmp.lt.u32.totalorder %s569_s19, %s761_s0 }
  0x17   :  { %p575_p10 = pnand %p573_p9, %p570_p8 }
  0x19   :  { %578 = shalt.err (!%p575_p10)
}
  0x1a   :  { %s579_s24 = scalar_lea.vmem %s694_s27, 128  ;;  %p584_p12 = scmp.lt.s32.totalorder %s694_s27, %s694_s27 }
  0x1b   :  { %p580_p11 = scmp.ne.s32.totalorder %s694_s27, %s579_s24  ;;  %p585_p13 = scmp.lt.s32.totalorder %s579_s24, %s579_s24 }
  0x1d   :  { %p586_p0 = por %p585_p13, %p584_p12 }
  0x1f   :  { %p587_p1 = pnand %p586_p0, %p580_p11 }
  0x21   :  { %590 = shalt.err (!%p587_p1)
}
  0x22   :  { %26 = dma.hbm_to_vmem [thread:$0]  %s761_s0, 128, %s694_s27, [#allocation3], %s643_s13, %s643_s13, %s644_s14  }
  0x23   :  { %s645_s26 = smov [#allocation7]   ;;  %s591_s8 = scalar_lea.hbm %s764_s3, 2048 }
  0x24   :  { %s46_s28 = sshll.u32 %s645_s26, 4  ;;  %p592_p2 = scmp.ne.s32.totalorder %s764_s3, %s591_s8  ;;  %s47_s28 = int_to_ptr.vmem [resolvable:$true] %s46_s28 }
  0x25   :  { %p595_p3 = scmp.lt.u32.totalorder %s591_s8, %s764_s3 }
  0x27   :  { %p597_p4 = pnand %p595_p3, %p592_p2 }
  0x29   :  { %600 = shalt.err (!%p597_p4)
}
  0x2a   :  { %s601_s15 = scalar_lea.vmem %s47_s28, 2048  ;;  %p606_p6 = scmp.lt.s32.totalorder %s47_s28, %s47_s28 }
  0x2b   :  { %p602_p5 = scmp.ne.s32.totalorder %s47_s28, %s601_s15  ;;  %p607_p7 = scmp.lt.s32.totalorder %s601_s15, %s601_s15 }
  0x2d   :  { %p608_p8 = por %p607_p7, %p606_p6 }
  0x2f   :  { %p609_p9 = pnand %p608_p8, %p602_p5 }
  0x31   :  { %612 = shalt.err (!%p609_p9)
}
  0x32   :  { %s646_s0 = smov 128   ;;  %s647_s27 = smov 8  }
  0x33   :  { %52 = dma.hbm_to_vmem [thread:$0]  %s764_s3, 2048, %s47_s28, [#allocation6], %s646_s0, %s646_s0, %s647_s27  }
  0x34   :  { %635 = dma.done.wait [#allocation3], 128  }
  0x35   :  { %636 = vsyncadd [#allocation3], 4294967168 }
  0x36   :  { %637 = dma.done.wait [#allocation6], 3072  }
  0x37   :  { %638 = vsyncadd [#allocation6], 4294964224  ;;  %v648_v0 = vmov 0.0   ;;  %vm649_vm0 = vmmov 0   ;;  %v506_v1 = vld [vmem:[#allocation5] sm:$0xff]   ;;  %v507_v2 = vld [vmem:[#allocation5 + $0x8] sm:$0xff]   ;;  %v218_v45 = vlaneseq }
  0x38   :  { %473 = vmatprep.subr.bf16.mxu0 %v648_v0  ;;  %489 = vmatprep.mubr.msk.bf16.mxu0 %vm649_vm0, %v648_v0  ;;  %v508_v3 = vld [vmem:[#allocation5 + $0x10] sm:$0xff]   ;;  %v509_v4 = vld [vmem:[#allocation5 + $0x18] sm:$0xff]   ;;  %v515_v5 = vld [vmem:[#allocation7 + $0x4] ss:$8 sps:$4 sm:$0xff]   ;;  %v650_v26 = vmov 0   ;;  %s651_s21 = smov [#allocation8]  }
  0x39   :  { %474 = vmatpush3.bf16.msra.mxu0 %v506_v1  ;;  %v517_v6 = vld [vmem:[#allocation7] ss:$8 sps:$4 sm:$0xff]   ;;  %308 = vmatprep.subr.bf16.mxu1 %v515_v5  ;;  %v518_v7 = vld [vmem:[#allocation7 + $0x14] ss:$8 sps:$4 sm:$0xff]   ;;  %v520_v8 = vld [vmem:[#allocation7 + $0x10] ss:$8 sps:$4 sm:$0xff]  }
  0x3a   :  { %475 = vmatprep.subr.bf16.mxu0 %v648_v0  ;;  %v510_v9 = vld [vmem:[#allocation5 + $0x20] sm:$0xff]   ;;  %309 = vmatpush1.bf16.msra.mxu1 %v517_v6  ;;  %v511_v10 = vld [vmem:[#allocation5 + $0x28] sm:$0xff]   ;;  %v512_v11 = vld [vmem:[#allocation5 + $0x30] sm:$0xff]   ;;  %v219_v46 = vshrl.u32 %v218_v45, 7 }
  0x3b   :  { %310 = vmatprep.subr.bf16.mxu1 %v518_v7  ;;  %v513_v12 = vld [vmem:[#allocation5 + $0x38] sm:$0xff]   ;;  %v521_v14 = vld [vmem:[#allocation7 + $0x24] ss:$8 sps:$4 sm:$0xff]   ;;  %v523_v15 = vld [vmem:[#allocation7 + $0x20] ss:$8 sps:$4 sm:$0xff]   ;;  %340 = vmatprep.mubr.bf16.mxu1 %v650_v26 }
  0x3c   :  { %v514_v13 = vld [vmem:[#allocation2] sm:$0xff]   ;;  %v527_v18 = vld [vmem:[#allocation7 + $0x44] ss:$8 sps:$4 sm:$0xff]   ;;  %v529_v19 = vld [vmem:[#allocation7 + $0x40] ss:$8 sps:$4 sm:$0xff]   ;;  %v220_v47 = vsub.s32 0, %v219_v46 }
  0x3d   :  { %476 = vmatpush3.bf16.msra.mxu0 %v507_v2  ;;  %v524_v16 = vld [vmem:[#allocation7 + $0x34] ss:$8 sps:$4 sm:$0xff]   ;;  %v526_v17 = vld [vmem:[#allocation7 + $0x30] ss:$8 sps:$4 sm:$0xff]   ;;  %v533_v22 = vld [vmem:[#allocation7 + $0x64] ss:$8 sps:$4 sm:$0xff]  }
  0x3e   :  { %477 = vmatprep.subr.bf16.mxu0 %v648_v0  ;;  %311 = vmatpush1.bf16.msra.mxu1 %v520_v8  ;;  %v530_v20 = vld [vmem:[#allocation7 + $0x54] ss:$8 sps:$4 sm:$0xff]   ;;  %v532_v21 = vld [vmem:[#allocation7 + $0x50] ss:$8 sps:$4 sm:$0xff]   ;;  %v535_v23 = vld [vmem:[#allocation7 + $0x60] ss:$8 sps:$4 sm:$0xff]  }
  0x3f   :  { %312 = vmatprep.subr.bf16.mxu1 %v521_v14  ;;  %v536_v24 = vld [vmem:[#allocation7 + $0x74] ss:$8 sps:$4 sm:$0xff]   ;;  %v538_v25 = vld [vmem:[#allocation7 + $0x70] ss:$8 sps:$4 sm:$0xff]   ;;  %v224_v49 = vsub.s32 1, %v219_v46 }
  0x40   :  { %v438_v27 = vld [vmem:[%s763_s2] ss:$0 sm:$0xff] }
  0x41   :  { %478 = vmatpush3.bf16.msra.mxu0 %v508_v3  ;;  %v216_v48 = vld [vmem:[%s765_s4] sm:$0x3] }
  0x42   :  { %479 = vmatprep.subr.bf16.mxu0 %v648_v0  ;;  %313 = vmatpush1.bf16.msra.mxu1 %v523_v15  ;;  %v221_v50 = vrot.slane %v216_v48, %v220_v47  ;;  %v225_v51 = vrot.slane %v216_v48, %v224_v49 }
  0x43   :  { %314 = vmatprep.subr.bf16.mxu1 %v524_v16 }
  0x45   :  { %480 = vmatpush3.bf16.msra.mxu0 %v509_v4 }
  0x46   :  { %481 = vmatprep.subr.bf16.mxu0 %v648_v0  ;;  %315 = vmatpush1.bf16.msra.mxu1 %v526_v17 }
  0x47   :  { %316 = vmatprep.subr.bf16.mxu1 %v527_v18  ;;  %v384_v18 = vld [vmem:[%s766_s5] sm:$0x3]  ;;  %s425_s5 = sshll.u32 %s651_s21, 4  ;;  %s426_s5 = int_to_ptr.vmem [resolvable:$true] %s425_s5 }
  0x48   :  { %p618_p11 = scmp.lt.s32.totalorder %s426_s5, %s426_s5 }
  0x49   :  { %482 = vmatpush3.bf16.msra.mxu0 %v510_v9 }
  0x4a   :  { %483 = vmatprep.subr.bf16.mxu0 %v648_v0  ;;  %317 = vmatpush1.bf16.msra.mxu1 %v529_v19  ;;  %v400_v19 = vld [vmem:[%s767_s6] sm:$0x3]  ;;  %s613_s6 = scalar_lea.vmem %s426_s5, 512 }
  0x4b   :  { %318 = vmatprep.subr.bf16.mxu1 %v530_v20  ;;  %v389_v20 = vrot.slane %v384_v18, %v220_v47  ;;  %p614_p10 = scmp.ne.s32.totalorder %s426_s5, %s613_s6  ;;  %p619_p12 = scmp.lt.s32.totalorder %s613_s6, %s613_s6 }
  0x4d   :  { %484 = vmatpush3.bf16.msra.mxu0 %v511_v10  ;;  %p620_p13 = por %p619_p12, %p618_p11 }
  0x4e   :  { %485 = vmatprep.subr.bf16.mxu0 %v648_v0  ;;  %319 = vmatpush1.bf16.msra.mxu1 %v532_v21  ;;  %v393_v21 = vrot.slane %v384_v18, %v224_v49 }
  0x4f   :  { %320 = vmatprep.subr.bf16.mxu1 %v533_v22  ;;  %p621_p0 = pnand %p620_p13, %p614_p10 }
  0x51   :  { %486 = vmatpush3.bf16.msra.mxu0 %v512_v11 }
  0x52   :  { %487 = vmatprep.subr.bf16.mxu0 %v648_v0  ;;  %321 = vmatpush1.bf16.msra.mxu1 %v535_v23  ;;  %v405_v23 = vrot.slane %v400_v19, %v220_v47 }
  0x53   :  { %322 = vmatprep.subr.bf16.mxu1 %v536_v24  ;;  %v409_v24 = vrot.slane %v400_v19, %v224_v49 }
  0x55   :  { %488 = vmatpush3.bf16.msra.mxu0 %v513_v12 }
  0x56   :  { %323 = vmatpush1.bf16.msra.mxu1 %v538_v25 }
  0x58   :  { %490 = vmatmul.mubr.bf16.vlgmr.msra.gmra.mrb[0].mxu0 %v514_v13 }
 0x12b   :  { %v182_v28 = vpop.f32.mrb[0].mxu0 }
 0x12c   :  { %v183_v29 = vadd.f32 %v438_v27, %v182_v28  ;;  %v491_v30 = vpop.f32.mrb[1].mxu0 }
 0x12d   :  { %v185_v31 = vpop.f32.mrb[2].mxu0 }
 0x12e   :  { %v189_v32 = vmul.f32 0.70710677, %v183_v29  ;;  %v186_v33 = vadd.f32 %v438_v27, %v185_v31  ;;  %v492_v34 = vpop.f32.mrb[3].mxu0 }
 0x130   :  { %539 = verf.f32 %v189_v32  ;;  %v190_v35 = vmul.f32 0.70710677, %v186_v33 }
 0x132   :  { %541 = verf.f32 %v190_v35 }
 0x13a   :  { %v540_v36 = vpop.eup %539 }
 0x13b   :  { %v193_v37 = vadd.f32 1.0, %v540_v36 }
 0x13c   :  { %v542_v38 = vpop.eup %541 }
 0x13d   :  { %v195_v39 = vmul.f32 0.5, %v193_v37  ;;  %v194_v40 = vadd.f32 1.0, %v542_v38 }
 0x13f   :  { %v196_v41 = vmul.f32 0.5, %v194_v40  ;;  %v197_v42 = vmul.f32 %v195_v39, %v183_v29 }
 0x141   :  { %v198_v43 = vmul.f32 %v196_v41, %v186_v33 }
 0x143   :  { %v199_v44 = vpack.c.bf16 %v198_v43, %v197_v42 }
 0x145   :  { %341 = vmatmul.mubr.bf16.vlgmr.msra.gmra.mrb[0].mxu1 %v199_v44 }
 0x218   :  { %v342_v52 = vpop.f32.mrb[0].mxu1 }
 0x219   :  { %v343_v53 = vadd.f32 %v342_v52, %v221_v50  ;;  %v344_v54 = vpop.f32.mrb[1].mxu1 }
 0x21a   :  { %v345_v55 = vadd.f32 %v344_v54, %v225_v51  ;;  %v346_v56 = vpop.f32.mrb[2].mxu1 }
 0x21b   :  { %v348_v57 = vpop.f32.mrb[3].mxu1  ;;  %v347_v58 = vadd.f32 %v346_v56, %v221_v50 }
 0x21c   :  { %v349_v59 = vadd.f32 %v348_v57, %v225_v51  ;;  %v351_v60 = vadd.f32 %v345_v55, %v343_v53 }
 0x21e   :  { %352 = vadd.xlane.f32.xlu0 %v351_v60  ;;  %v354_v61 = vadd.f32 %v349_v59, %v347_v58 }
 0x222   :  { %355 = vadd.xlane.f32.xlu0 %v354_v61 }
 0x2ab   :  { %v353_v62 = vpop.xlane.xlu0 %352 }
 0x2ac   :  { %v358_v63 = vmul.f32 0.00390625, %v353_v62 }
 0x2ae   :  { %v360_v0 = vsub.f32 %v343_v53, %v358_v63  ;;  %v361_v1 = vsub.f32 %v345_v55, %v358_v63 }
 0x2af   :  { %v356_v2 = vpop.xlane.xlu0 %355 }
 0x2b0   :  { %v359_v3 = vmul.f32 0.00390625, %v356_v2  ;;  %v364_v4 = vmul.f32 %v360_v0, %v360_v0  ;;  %v365_v5 = vmul.f32 %v361_v1, %v361_v1 }
 0x2b2   :  { %v362_v6 = vsub.f32 %v347_v58, %v359_v3  ;;  %v363_v7 = vsub.f32 %v349_v59, %v359_v3  ;;  %v368_v8 = vadd.f32 %v365_v5, %v364_v4 }
 0x2b4   :  { %369 = vadd.xlane.f32.xlu1 %v368_v8  ;;  %v366_v9 = vmul.f32 %v362_v6, %v362_v6  ;;  %v367_v10 = vmul.f32 %v363_v7, %v363_v7 }
 0x2b6   :  { %v371_v11 = vadd.f32 %v367_v10, %v366_v9 }
 0x2b8   :  { %372 = vadd.xlane.f32.xlu1 %v371_v11 }
 0x341   :  { %v370_v12 = vpop.xlane.xlu1 %369 }
 0x342   :  { %v374_v13 = vmul.f32 0.00390625, %v370_v12 }
 0x344   :  { %v376_v14 = vadd.f32 1e-05, %v374_v13 }
 0x345   :  { %v373_v15 = vpop.xlane.xlu1 %372 }
 0x346   :  { %543 = vrsqrt.f32 %v376_v14  ;;  %v375_v16 = vmul.f32 0.00390625, %v373_v15 }
 0x348   :  { %v377_v17 = vadd.f32 1e-05, %v375_v16 }
 0x34a   :  { %545 = vrsqrt.f32 %v377_v17 }
 0x350   :  { %v544_v22 = vpop.eup %543 }
 0x351   :  { %v380_v25 = vmul.f32 %v544_v22, %v360_v0  ;;  %v381_v26 = vmul.f32 %v544_v22, %v361_v1 }
 0x353   :  { %v396_v27 = vmul.f32 %v389_v20, %v380_v25  ;;  %v397_v28 = vmul.f32 %v393_v21, %v381_v26 }
 0x354   :  { %v546_v29 = vpop.eup %545 }
 0x355   :  { %v412_v30 = vadd.f32 %v405_v23, %v396_v27  ;;  %v413_v31 = vadd.f32 %v409_v24, %v397_v28  ;;  %v382_v32 = vmul.f32 %v546_v29, %v362_v6  ;;  %v383_v33 = vmul.f32 %v546_v29, %v363_v7 }
 0x357   :  { %416 = vst [vmem:[#allocation8] sm:$0xff] %v412_v30  ;;  %417 = vst [vmem:[#allocation8 + $0x8] sm:$0xff] %v413_v31  ;;  %v398_v34 = vmul.f32 %v389_v20, %v382_v32  ;;  %v399_v35 = vmul.f32 %v393_v21, %v383_v33 }
 0x359   :  { %v414_v36 = vadd.f32 %v405_v23, %v398_v34  ;;  %v415_v37 = vadd.f32 %v409_v24, %v399_v35 }
 0x35b   :  { %418 = vst [vmem:[#allocation8 + $0x10] sm:$0xff] %v414_v36  ;;  %419 = vst [vmem:[#allocation8 + $0x18] sm:$0xff] %v415_v37 }
 0x35c   :  { %624 = shalt.err (!%p621_p0)
}
 0x35d   :  { %s625_s24 = scalar_lea.hbm %s768_s7, 512 }
 0x35e   :  { %p626_p1 = scmp.ne.s32.totalorder %s768_s7, %s625_s24  ;;  %p629_p2 = scmp.lt.u32.totalorder %s625_s24, %s768_s7 }
 0x360   :  { %p631_p3 = pnand %p629_p2, %p626_p1 }
 0x362   :  { %634 = shalt.err (!%p631_p3)
}
 0x363   :  { %s652_s29 = smov 256   ;;  %s653_s30 = smov 16  }
 0x364   :  { %431 = dma.vmem_to_hbm [thread:$0]  %s426_s5, 512, %s768_s7, [#allocation4], %s652_s29, %s652_s29, %s653_s30  }
 0x365   :  { %639 = dma.done.wait [#allocation4], 512  }
 0x366   :  { %640 = vsyncadd [#allocation4], 4294966784 }
 0x367   :  { %435 = vsyncpa [#allocation3], 1 }
 0x368   :  { %436 = vsyncpa [#allocation6], 1 }
 0x369   :  { %437 = vsyncpa [#allocation4], 1 }

// kernel: tpu_custom_call.1
= control target key start
LH: loop header
LB: loop body
LE: loop exit
PB: predicated region body
PF: predicated region fallthrough
CT: control target
= control target key end

     0   :  { %12 = vsyncpa [#allocation3], 0  ;;  %s761_s0 = inlined_call_operand.hbm [shape: bf16[16,128], index: 0, kind: input, shape index: {}]   ;;  %s762_s1 = inlined_call_operand.hbm [shape: bf16[128,128], index: 1, kind: input, shape index: {}]   ;;  %s763_s2 = inlined_call_operand.vmem [shape: f32[1,128], index: 2, kind: input, shape index: {}]   ;;  %s764_s3 = inlined_call_operand.hbm [shape: bf16[128,256], index: 3, kind: input, shape index: {}]   ;;  %s765_s4 = inlined_call_operand.vmem [shape: f32[1,256], index: 4, kind: input, shape index: {}]   ;;  %s766_s5 = inlined_call_operand.vmem [shape: f32[1,256], index: 5, kind: input, shape index: {}]   ;;  %s767_s6 = inlined_call_operand.vmem [shape: f32[1,256], index: 6, kind: input, shape index: {}]   ;;  %s768_s7 = inlined_call_operand.hbm [shape: f32[16,256], index: 7, kind: output, shape index: {}]  }
   0x1   :  { %13 = vsyncpa [#allocation6], 0 }
   0x2   :  { %14 = vsyncpa [#allocation4], 0  ;;  %s641_s24 = smov [#allocation5]   ;;  %s642_s26 = smov [#allocation2]  }
   0x3   :  { %s32_s25 = sshll.u32 %s641_s24, 4  ;;  %s20_s27 = sshll.u32 %s642_s26, 4  ;;  %s33_s25 = int_to_ptr.vmem [resolvable:$true] %s32_s25  ;;  %s694_s27 = int_to_ptr.vmem [resolvable:$true] %s20_s27 }
   0x4   :  { %s547_s30 = scalar_lea.hbm %s762_s1, 1024 }
   0x5   :  { %p548_p0 = scmp.ne.s32.totalorder %s762_s1, %s547_s30  ;;  %p551_p1 = scmp.lt.u32.totalorder %s547_s30, %s762_s1 }
   0x7   :  { %p553_p2 = pnand %p551_p1, %p548_p0 }
   0x9   :  { %556 = shalt.err (!%p553_p2)
}
   0xa   :  { %s557_s12 = scalar_lea.vmem %s33_s25, 1024  ;;  %p562_p4 = scmp.lt.s32.totalorder %s33_s25, %s33_s25 }
   0xb   :  { %p558_p3 = scmp.ne.s32.totalorder %s33_s25, %s557_s12  ;;  %p563_p5 = scmp.lt.s32.totalorder %s557_s12, %s557_s12 }
   0xd   :  { %p564_p6 = por %p563_p5, %p562_p4 }
   0xf   :  { %p565_p7 = pnand %p564_p6, %p558_p3 }
  0x11   :  { %568 = shalt.err (!%p565_p7)
}
  0x12   :  { %s643_s13 = smov 64   ;;  %s644_s14 = smov 4  }
  0x13   :  { %38 = dma.hbm_to_vmem [thread:$0]  %s762_s1, 1024, %s33_s25, [#allocation6], %s643_s13, %s643_s13, %s644_s14  }
  0x14   :  { %s569_s19 = scalar_lea.hbm %s761_s0, 128 }
  0x15   :  { %p570_p8 = scmp.ne.s32.totalorder %s761_s0, %s569_s19  ;;  %p573_p9 = scmp.lt.u32.totalorder %s569_s19, %s761_s0 }
  0x17   :  { %p575_p10 = pnand %p573_p9, %p570_p8 }
  0x19   :  { %578 = shalt.err (!%p575_p10)
}
  0x1a   :  { %s579_s24 = scalar_lea.vmem %s694_s27, 128  ;;  %p584_p12 = scmp.lt.s32.totalorder %s694_s27, %s694_s27 }
  0x1b   :  { %p580_p11 = scmp.ne.s32.totalorder %s694_s27, %s579_s24  ;;  %p585_p13 = scmp.lt.s32.totalorder %s579_s24, %s579_s24 }
  0x1d   :  { %p586_p0 = por %p585_p13, %p584_p12 }
  0x1f   :  { %p587_p1 = pnand %p586_p0, %p580_p11 }
  0x21   :  { %590 = shalt.err (!%p587_p1)
}
  0x22   :  { %26 = dma.hbm_to_vmem [thread:$0]  %s761_s0, 128, %s694_s27, [#allocation3], %s643_s13, %s643_s13, %s644_s14  }
  0x23   :  { %s645_s26 = smov [#allocation7]   ;;  %s591_s8 = scalar_lea.hbm %s764_s3, 2048 }
  0x24   :  { %s46_s28 = sshll.u32 %s645_s26, 4  ;;  %p592_p2 = scmp.ne.s32.totalorder %s764_s3, %s591_s8  ;;  %s47_s28 = int_to_ptr.vmem [resolvable:$true] %s46_s28 }
  0x25   :  { %p595_p3 = scmp.lt.u32.totalorder %s591_s8, %s764_s3 }
  0x27   :  { %p597_p4 = pnand %p595_p3, %p592_p2 }
  0x29   :  { %600 = shalt.err (!%p597_p4)
}
  0x2a   :  { %s601_s15 = scalar_lea.vmem %s47_s28, 2048  ;;  %p606_p6 = scmp.lt.s32.totalorder %s47_s28, %s47_s28 }
  0x2b   :  { %p602_p5 = scmp.ne.s32.totalorder %s47_s28, %s601_s15  ;;  %p607_p7 = scmp.lt.s32.totalorder %s601_s15, %s601_s15 }
  0x2d   :  { %p608_p8 = por %p607_p7, %p606_p6 }
  0x2f   :  { %p609_p9 = pnand %p608_p8, %p602_p5 }
  0x31   :  { %612 = shalt.err (!%p609_p9)
}
  0x32   :  { %s646_s0 = smov 128   ;;  %s647_s27 = smov 8  }
  0x33   :  { %52 = dma.hbm_to_vmem [thread:$0]  %s764_s3, 2048, %s47_s28, [#allocation6], %s646_s0, %s646_s0, %s647_s27  }
  0x34   :  { %635 = dma.done.wait [#allocation3], 128  }
  0x35   :  { %636 = vsyncadd [#allocation3], 4294967168 }
  0x36   :  { %637 = dma.done.wait [#allocation6], 3072  }
  0x37   :  { %638 = vsyncadd [#allocation6], 4294964224  ;;  %v648_v0 = vmov 0.0   ;;  %vm649_vm0 = vmmov 0   ;;  %v506_v1 = vld [vmem:[#allocation5] sm:$0xff]   ;;  %v507_v2 = vld [vmem:[#allocation5 + $0x8] sm:$0xff]   ;;  %v218_v45 = vlaneseq }
  0x38   :  { %473 = vmatprep.subr.bf16.mxu0 %v648_v0  ;;  %489 = vmatprep.mubr.msk.bf16.mxu0 %vm649_vm0, %v648_v0  ;;  %v508_v3 = vld [vmem:[#allocation5 + $0x10] sm:$0xff]   ;;  %v509_v4 = vld [vmem:[#allocation5 + $0x18] sm:$0xff]   ;;  %v515_v5 = vld [vmem:[#allocation7 + $0x4] ss:$8 sps:$4 sm:$0xff]   ;;  %v650_v26 = vmov 0   ;;  %s651_s21 = smov [#allocation8]  }
  0x39   :  { %474 = vmatpush3.bf16.msra.mxu0 %v506_v1  ;;  %v517_v6 = vld [vmem:[#allocation7] ss:$8 sps:$4 sm:$0xff]   ;;  %308 = vmatprep.subr.bf16.mxu1 %v515_v5  ;;  %v518_v7 = vld [vmem:[#allocation7 + $0x14] ss:$8 sps:$4 sm:$0xff]   ;;  %v520_v8 = vld [vmem:[#allocation7 + $0x10] ss:$8 sps:$4 sm:$0xff]  }
  0x3a   :  { %475 = vmatprep.subr.bf16.mxu0 %v648_v0  ;;  %v510_v9 = vld [vmem:[#allocation5 + $0x20] sm:$0xff]   ;;  %309 = vmatpush1.bf16.msra.mxu1 %v517_v6  ;;  %v511_v10 = vld [vmem:[#allocation5 + $0x28] sm:$0xff]   ;;  %v512_v11 = vld [vmem:[#allocation5 + $0x30] sm:$0xff]   ;;  %v219_v46 = vshrl.u32 %v218_v45, 7 }
  0x3b   :  { %310 = vmatprep.subr.bf16.mxu1 %v518_v7  ;;  %v513_v12 = vld [vmem:[#allocation5 + $0x38] sm:$0xff]   ;;  %v521_v14 = vld [vmem:[#allocation7 + $0x24] ss:$8 sps:$4 sm:$0xff]   ;;  %v523_v15 = vld [vmem:[#allocation7 + $0x20] ss:$8 sps:$4 sm:$0xff]   ;;  %340 = vmatprep.mubr.bf16.mxu1 %v650_v26 }
  0x3c   :  { %v514_v13 = vld [vmem:[#allocation2] sm:$0xff]   ;;  %v527_v18 = vld [vmem:[#allocation7 + $0x44] ss:$8 sps:$4 sm:$0xff]   ;;  %v529_v19 = vld [vmem:[#allocation7 + $0x40] ss:$8 sps:$4 sm:$0xff]   ;;  %v220_v47 = vsub.s32 0, %v219_v46 }
  0x3d   :  { %476 = vmatpush3.bf16.msra.mxu0 %v507_v2  ;;  %v524_v16 = vld [vmem:[#allocation7 + $0x34] ss:$8 sps:$4 sm:$0xff]   ;;  %v526_v17 = vld [vmem:[#allocation7 + $0x30] ss:$8 sps:$4 sm:$0xff]   ;;  %v533_v22 = vld [vmem:[#allocation7 + $0x64] ss:$8 sps:$4 sm:$0xff]  }
  0x3e   :  { %477 = vmatprep.subr.bf16.mxu0 %v648_v0  ;;  %311 = vmatpush1.bf16.msra.mxu1 %v520_v8  ;;  %v530_v20 = vld [vmem:[#allocation7 + $0x54] ss:$8 sps:$4 sm:$0xff]   ;;  %v532_v21 = vld [vmem:[#allocation7 + $0x50] ss:$8 sps:$4 sm:$0xff]   ;;  %v535_v23 = vld [vmem:[#allocation7 + $0x60] ss:$8 sps:$4 sm:$0xff]  }
  0x3f   :  { %312 = vmatprep.subr.bf16.mxu1 %v521_v14  ;;  %v536_v24 = vld [vmem:[#allocation7 + $0x74] ss:$8 sps:$4 sm:$0xff]   ;;  %v538_v25 = vld [vmem:[#allocation7 + $0x70] ss:$8 sps:$4 sm:$0xff]   ;;  %v224_v49 = vsub.s32 1, %v219_v46 }
  0x40   :  { %v438_v27 = vld [vmem:[%s763_s2] ss:$0 sm:$0xff] }
  0x41   :  { %478 = vmatpush3.bf16.msra.mxu0 %v508_v3  ;;  %v216_v48 = vld [vmem:[%s765_s4] sm:$0x3] }
  0x42   :  { %479 = vmatprep.subr.bf16.mxu0 %v648_v0  ;;  %313 = vmatpush1.bf16.msra.mxu1 %v523_v15  ;;  %v221_v50 = vrot.slane %v216_v48, %v220_v47  ;;  %v225_v51 = vrot.slane %v216_v48, %v224_v49 }
  0x43   :  { %314 = vmatprep.subr.bf16.mxu1 %v524_v16 }
  0x45   :  { %480 = vmatpush3.bf16.msra.mxu0 %v509_v4 }
  0x46   :  { %481 = vmatprep.subr.bf16.mxu0 %v648_v0  ;;  %315 = vmatpush1.bf16.msra.mxu1 %v526_v17 }
  0x47   :  { %316 = vmatprep.subr.bf16.mxu1 %v527_v18  ;;  %v384_v18 = vld [vmem:[%s766_s5] sm:$0x3]  ;;  %s425_s5 = sshll.u32 %s651_s21, 4  ;;  %s426_s5 = int_to_ptr.vmem [resolvable:$true] %s425_s5 }
  0x48   :  { %p618_p11 = scmp.lt.s32.totalorder %s426_s5, %s426_s5 }
  0x49   :  { %482 = vmatpush3.bf16.msra.mxu0 %v510_v9 }
  0x4a   :  { %483 = vmatprep.subr.bf16.mxu0 %v648_v0  ;;  %317 = vmatpush1.bf16.msra.mxu1 %v529_v19  ;;  %v400_v19 = vld [vmem:[%s767_s6] sm:$0x3]  ;;  %s613_s6 = scalar_lea.vmem %s426_s5, 512 }
  0x4b   :  { %318 = vmatprep.subr.bf16.mxu1 %v530_v20  ;;  %v389_v20 = vrot.slane %v384_v18, %v220_v47  ;;  %p614_p10 = scmp.ne.s32.totalorder %s426_s5, %s613_s6  ;;  %p619_p12 = scmp.lt.s32.totalorder %s613_s6, %s613_s6 }
  0x4d   :  { %484 = vmatpush3.bf16.msra.mxu0 %v511_v10  ;;  %p620_p13 = por %p619_p12, %p618_p11 }
  0x4e   :  { %485 = vmatprep.subr.bf16.mxu0 %v648_v0  ;;  %319 = vmatpush1.bf16.msra.mxu1 %v532_v21  ;;  %v393_v21 = vrot.slane %v384_v18, %v224_v49 }
  0x4f   :  { %320 = vmatprep.subr.bf16.mxu1 %v533_v22  ;;  %p621_p0 = pnand %p620_p13, %p614_p10 }
  0x51   :  { %486 = vmatpush3.bf16.msra.mxu0 %v512_v11 }
  0x52   :  { %487 = vmatprep.subr.bf16.mxu0 %v648_v0  ;;  %321 = vmatpush1.bf16.msra.mxu1 %v535_v23  ;;  %v405_v23 = vrot.slane %v400_v19, %v220_v47 }
  0x53   :  { %322 = vmatprep.subr.bf16.mxu1 %v536_v24  ;;  %v409_v24 = vrot.slane %v400_v19, %v224_v49 }
  0x55   :  { %488 = vmatpush3.bf16.msra.mxu0 %v513_v12 }
  0x56   :  { %323 = vmatpush1.bf16.msra.mxu1 %v538_v25 }
  0x58   :  { %490 = vmatmul.mubr.bf16.vlgmr.msra.gmra.mrb[0].mxu0 %v514_v13 }
 0x12b   :  { %v182_v28 = vpop.f32.mrb[0].mxu0 }
 0x12c   :  { %v183_v29 = vadd.f32 %v438_v27, %v182_v28  ;;  %v491_v30 = vpop.f32.mrb[1].mxu0 }
 0x12d   :  { %v185_v31 = vpop.f32.mrb[2].mxu0 }
 0x12e   :  { %v189_v32 = vmul.f32 0.70710677, %v183_v29  ;;  %v186_v33 = vadd.f32 %v438_v27, %v185_v31  ;;  %v492_v34 = vpop.f32.mrb[3].mxu0 }
 0x130   :  { %539 = verf.f32 %v189_v32  ;;  %v190_v35 = vmul.f32 0.70710677, %v186_v33 }
 0x132   :  { %541 = verf.f32 %v190_v35 }
 0x13a   :  { %v540_v36 = vpop.eup %539 }
 0x13b   :  { %v193_v37 = vadd.f32 1.0, %v540_v36 }
 0x13c   :  { %v542_v38 = vpop.eup %541 }
 0x13d   :  { %v195_v39 = vmul.f32 0.5, %v193_v37  ;;  %v194_v40 = vadd.f32 1.0, %v542_v38 }
 0x13f   :  { %v196_v41 = vmul.f32 0.5, %v194_v40  ;;  %v197_v42 = vmul.f32 %v195_v39, %v183_v29 }
 0x141   :  { %v198_v43 = vmul.f32 %v196_v41, %v186_v33 }
 0x143   :  { %v199_v44 = vpack.c.bf16 %v198_v43, %v197_v42 }
 0x145   :  { %341 = vmatmul.mubr.bf16.vlgmr.msra.gmra.mrb[0].mxu1 %v199_v44 }
 0x218   :  { %v342_v52 = vpop.f32.mrb[0].mxu1 }
 0x219   :  { %v343_v53 = vadd.f32 %v342_v52, %v221_v50  ;;  %v344_v54 = vpop.f32.mrb[1].mxu1 }
 0x21a   :  { %v345_v55 = vadd.f32 %v344_v54, %v225_v51  ;;  %v346_v56 = vpop.f32.mrb[2].mxu1 }
 0x21b   :  { %v348_v57 = vpop.f32.mrb[3].mxu1  ;;  %v347_v58 = vadd.f32 %v346_v56, %v221_v50 }
 0x21c   :  { %v349_v59 = vadd.f32 %v348_v57, %v225_v51  ;;  %v351_v60 = vadd.f32 %v345_v55, %v343_v53 }
 0x21e   :  { %352 = vadd.xlane.f32.xlu0 %v351_v60  ;;  %v354_v61 = vadd.f32 %v349_v59, %v347_v58 }
 0x222   :  { %355 = vadd.xlane.f32.xlu0 %v354_v61 }
 0x2ab   :  { %v353_v62 = vpop.xlane.xlu0 %352 }
 0x2ac   :  { %v358_v63 = vmul.f32 0.00390625, %v353_v62 }
 0x2ae   :  { %v360_v0 = vsub.f32 %v343_v53, %v358_v63  ;;  %v361_v1 = vsub.f32 %v345_v55, %v358_v63 }
 0x2af   :  { %v356_v2 = vpop.xlane.xlu0 %355 }
 0x2b0   :  { %v359_v3 = vmul.f32 0.00390625, %v356_v2  ;;  %v364_v4 = vmul.f32 %v360_v0, %v360_v0  ;;  %v365_v5 = vmul.f32 %v361_v1, %v361_v1 }
 0x2b2   :  { %v362_v6 = vsub.f32 %v347_v58, %v359_v3  ;;  %v363_v7 = vsub.f32 %v349_v59, %v359_v3  ;;  %v368_v8 = vadd.f32 %v365_v5, %v364_v4 }
 0x2b4   :  { %369 = vadd.xlane.f32.xlu1 %v368_v8  ;;  %v366_v9 = vmul.f32 %v362_v6, %v362_v6  ;;  %v367_v10 = vmul.f32 %v363_v7, %v363_v7 }
 0x2b6   :  { %v371_v11 = vadd.f32 %v367_v10, %v366_v9 }
 0x2b8   :  { %372 = vadd.xlane.f32.xlu1 %v371_v11 }
 0x341   :  { %v370_v12 = vpop.xlane.xlu1 %369 }
 0x342   :  { %v374_v13 = vmul.f32 0.00390625, %v370_v12 }
 0x344   :  { %v376_v14 = vadd.f32 1e-05, %v374_v13 }
 0x345   :  { %v373_v15 = vpop.xlane.xlu1 %372 }
 0x346   :  { %543 = vrsqrt.f32 %v376_v14  ;;  %v375_v16 = vmul.f32 0.00390625, %v373_v15 }
 0x348   :  { %v377_v17 = vadd.f32 1e-05, %v375_v16 }
 0x34a   :  { %545 = vrsqrt.f32 %v377_v17 }
 0x350   :  { %v544_v22 = vpop.eup %543 }
 0x351   :  { %v380_v25 = vmul.f32 %v544_v22, %v360_v0  ;;  %v381_v26 = vmul.f32 %v544_v22, %v361_v1 }
 0x353   :  { %v396_v27 = vmul.f32 %v389_v20, %v380_v25  ;;  %v397_v28 = vmul.f32 %v393_v21, %v381_v26 }
 0x354   :  { %v546_v29 = vpop.eup %545 }
 0x355   :  { %v412_v30 = vadd.f32 %v405_v23, %v396_v27  ;;  %v413_v31 = vadd.f32 %v409_v24, %v397_v28  ;;  %v382_v32 = vmul.f32 %v546_v29, %v362_v6  ;;  %v383_v33 = vmul.f32 %v546_v29, %v363_v7 }
 0x357   :  { %416 = vst [vmem:[#allocation8] sm:$0xff] %v412_v30  ;;  %417 = vst [vmem:[#allocation8 + $0x8] sm:$0xff] %v413_v31  ;;  %v398_v34 = vmul.f32 %v389_v20, %v382_v32  ;;  %v399_v35 = vmul.f32 %v393_v21, %v383_v33 }
 0x359   :  { %v414_v36 = vadd.f32 %v405_v23, %v398_v34  ;;  %v415_v37 = vadd.f32 %v409_v24, %v399_v35 }
 0x35b   :  { %418 = vst [vmem:[#allocation8 + $0x10] sm:$0xff] %v414_v36  ;;  %419 = vst [vmem:[#allocation8 + $0x18] sm:$0xff] %v415_v37 }
 0x35c   :  { %624 = shalt.err (!%p621_p0)
}
 0x35d   :  { %s625_s24 = scalar_lea.hbm %s768_s7, 512 }
 0x35e   :  { %p626_p1 = scmp.ne.s32.totalorder %s768_s7, %s625_s24  ;;  %p629_p2 = scmp.lt.u32.totalorder %s625_s24, %s768_s7 }
 0x360   :  { %p631_p3 = pnand %p629_p2, %p626_p1 }
 0x362   :  { %634 = shalt.err (!%p631_p3)
}
 0x363   :  { %s652_s29 = smov 256   ;;  %s653_s30 = smov 16  }
 0x364   :  { %431 = dma.vmem_to_hbm [thread:$0]  %s426_s5, 512, %s768_s7, [#allocation4], %s652_s29, %s652_s29, %s653_s30  }
 0x365   :  { %639 = dma.done.wait [#allocation4], 512  }
 0x366   :  { %640 = vsyncadd [#allocation4], 4294966784 }
 0x367   :  { %435 = vsyncpa [#allocation3], 1 }
 0x368   :  { %436 = vsyncpa [#allocation6], 1 }
 0x369   :  { %437 = vsyncpa [#allocation4], 1 }

</bundles_post_ra>
